<compile_context>
chip_gen: v7x
topology: tpu7x:2x2x1
jax: 0.10.0
libtpu: 0.0.40
codegen_flags: <defaults>
</compile_context>

<pallas_src>
import functools

import jax
import jax.numpy as jnp
from jax.experimental import pallas as pl
from jax.experimental.pallas import tpu as pltpu


def _mlp_encoder_kernel(min_logvar, max_logvar, z_dim, mm_dtype,
                        x_ref, w1_ref, b1_ref, w2_ref, b2_ref,
                        wh_ref, bh_ref, eps_ref, out_ref):
    # Matmul operands optionally in bf16; accumulation and elementwise tail in f32.
    x = x_ref[...].astype(mm_dtype)

    # fc1 + leaky_relu
    h1 = jnp.dot(x, w1_ref[...].astype(mm_dtype),
                 preferred_element_type=jnp.float32) + b1_ref[...]
    h1 = jnp.where(h1 > 0, h1, 0.01 * h1)

    # fc2 + leaky_relu
    h2 = jnp.dot(h1.astype(mm_dtype), w2_ref[...].astype(mm_dtype),
                 preferred_element_type=jnp.float32) + b2_ref[...]
    h2 = jnp.where(h2 > 0, h2, 0.01 * h2)

    # fused mean/logvar heads: one [TB, H] x [H, 2Z] matmul
    heads = jnp.dot(h2.astype(mm_dtype), wh_ref[...].astype(mm_dtype),
                    preferred_element_type=jnp.float32) + bh_ref[...]
    mu = heads[:, :z_dim]
    lv = jnp.clip(heads[:, z_dim:], min_logvar, max_logvar)

    # reparameterization: z = mu + eps * exp(0.5 * logvar)
    std = jnp.exp(0.5 * lv)
    z = mu + eps_ref[...] * std

    # single lane-dense store: [z | mu | logvar]
    out_ref[...] = jnp.concatenate([z, mu, lv], axis=-1)


def mlp_encoder_forward(x, params, eps, *, min_logvar, max_logvar,
                        block_rows=512, matmul_dtype=jnp.float32):
    """x: [B, input_shape] f32, eps: [B, z_dim] f32. Returns (z, mu, logvar, None)."""
    B, F = x.shape
    H = params["w1"].shape[1]
    Z = params["wm"].shape[1]

    # Fuse head weights/biases at trace time (done once under jit).
    wh = jnp.concatenate([params["wm"], params["wl"]], axis=1)   # [H, 2Z]
    bh = jnp.concatenate([params["bm"], params["bl"]], axis=1)   # [1, 2Z]

    # Batch tile: large (>=512) for realistic B, otherwise one sublane-aligned
    # tile that covers the whole (padded) batch.
    TB = block_rows
    if B <= TB:
        TB = -(-B // 8) * 8
    B_pad = -(-B // TB) * TB
    if B_pad != B:
        x = jnp.pad(x, ((0, B_pad - B), (0, 0)))
        eps = jnp.pad(eps, ((0, B_pad - B), (0, 0)))

    grid = (B_pad // TB,)

    # Scoped-VMEM budget: double-buffered batch tiles + resident params + margin.
    tile_bytes = 2 * TB * (F + Z + 3 * Z) * 4
    param_bytes = (F * H + H * H + H * 2 * Z + 4 * H + 2 * Z) * 4
    vmem_limit = int(min(64 << 20, max(2 * (tile_bytes + param_bytes), 16 << 20)))

    resident = lambda i: (0, 0)   # same block every step -> stays in VMEM
    tiled = lambda i: (i, 0)

    kernel = functools.partial(_mlp_encoder_kernel,
                               min_logvar, max_logvar, Z, matmul_dtype)

    out = pl.pallas_call(
        kernel,
        out_shape=jax.ShapeDtypeStruct((B_pad, 3 * Z), jnp.float32),
        grid=grid,
        in_specs=[
            pl.BlockSpec((TB, F), tiled),        # x
            pl.BlockSpec((F, H), resident),      # w1
            pl.BlockSpec((1, H), resident),      # b1
            pl.BlockSpec((H, H), resident),      # w2
            pl.BlockSpec((1, H), resident),      # b2
            pl.BlockSpec((H, 2 * Z), resident),  # fused head weight
            pl.BlockSpec((1, 2 * Z), resident),  # fused head bias
            pl.BlockSpec((TB, Z), tiled),        # eps
        ],
        out_specs=pl.BlockSpec((TB, 3 * Z), tiled),
        compiler_params=pltpu.CompilerParams(
            dimension_semantics=("parallel",),   # shards batch tiles across TCs on v7x
            vmem_limit_bytes=vmem_limit,
        ),
    )(
        x,
        params["w1"], params["b1"],
        params["w2"], params["b2"],
        wh, bh,
        eps,
    )

    z = out[:B, :Z]
    mu = out[:B, Z:2 * Z]
    logvar = out[:B, 2 * Z:]
    # TODO(synk): optional in-kernel eps via pltpu.prng_* (drops one HBM stream)
    # is omitted to keep exact jax.random reproducibility.
    return z, mu, logvar, None


def init_params(key, input_shape, hidden_dim, z_dim):
    """Deterministic synthetic parameter init (PyTorch Linear shapes, stored transposed)."""
    ks = jax.random.split(key, 8)

    def lin(kw, kb, fan_in, fan_out):
        bound = 1.0 / jnp.sqrt(fan_in)
        w = jax.random.uniform(kw, (fan_in, fan_out), jnp.float32, -bound, bound)
        b = jax.random.uniform(kb, (1, fan_out), jnp.float32, -bound, bound)
        return w, b

    w1, b1 = lin(ks[0], ks[1], input_shape, hidden_dim)
    w2, b2 = lin(ks[2], ks[3], hidden_dim, hidden_dim)
    wm, bm = lin(ks[4], ks[5], hidden_dim, z_dim)
    wl, bl = lin(ks[6], ks[7], hidden_dim, z_dim)
    return dict(w1=w1, b1=b1, w2=w2, b2=b2, wm=wm, bm=bm, wl=wl, bl=bl)


def _reference(x, params, eps, min_logvar, max_logvar):
    def leaky(v):
        return jnp.where(v > 0, v, 0.01 * v)
    h1 = leaky(x @ params["w1"] + params["b1"])
    h2 = leaky(h1 @ params["w2"] + params["b2"])
    mu = h2 @ params["wm"] + params["bm"]
    lv = jnp.clip(h2 @ params["wl"] + params["bl"], min_logvar, max_logvar)
    z = mu + eps * jnp.exp(0.5 * lv)
    return z, mu, lv


if __name__ == "__main__":
    # Small synthetic config consistent with the module:
    #   args.proxy_hidden_dim = 32, args.proxy_z_dim = 16,
    #   args.min_logvar = -10.0, args.max_logvar = 2.0
    INPUT_SHAPE = 32
    HIDDEN_DIM = 32
    Z_DIM = 16
    MIN_LOGVAR = -10.0
    MAX_LOGVAR = 2.0

    key = jax.random.PRNGKey(0)
    k_x, k_p, k_eps = jax.random.split(key, 3)
    params = init_params(k_p, INPUT_SHAPE, HIDDEN_DIM, Z_DIM)

    # --- Test 1: tiny batch, single tile (B=8) ---------------------------------
    B = 8
    x = jax.random.normal(k_x, (B, INPUT_SHAPE), jnp.float32)
    eps = jax.random.normal(k_eps, (B, Z_DIM), jnp.float32)

    z, mu, logvar, h_out = mlp_encoder_forward(
        x, params, eps, min_logvar=MIN_LOGVAR, max_logvar=MAX_LOGVAR)
    jax.block_until_ready((z, mu, logvar))

    z_r, mu_r, lv_r = _reference(x, params, eps, MIN_LOGVAR, MAX_LOGVAR)
    assert jnp.allclose(mu, mu_r, atol=1e-5), "mu mismatch (B=8)"
    assert jnp.allclose(logvar, lv_r, atol=1e-5), "logvar mismatch (B=8)"
    assert jnp.allclose(z, z_r, atol=1e-5), "z mismatch (B=8)"
    assert h_out is None

    # --- Test 2: multi-tile grid with batch padding (B=40, tile=16) ------------
    B2 = 40
    x2 = jax.random.normal(jax.random.fold_in(k_x, 1), (B2, INPUT_SHAPE), jnp.float32)
    eps2 = jax.random.normal(jax.random.fold_in(k_eps, 1), (B2, Z_DIM), jnp.float32)

    z2, mu2, lv2, _ = mlp_encoder_forward(
        x2, params, eps2, min_logvar=MIN_LOGVAR, max_logvar=MAX_LOGVAR,
        block_rows=16)
    jax.block_until_ready((z2, mu2, lv2))

    z2_r, mu2_r, lv2_r = _reference(x2, params, eps2, MIN_LOGVAR, MAX_LOGVAR)
    assert jnp.allclose(mu2, mu2_r, atol=1e-5), "mu mismatch (B=40)"
    assert jnp.allclose(lv2, lv2_r, atol=1e-5), "logvar mismatch (B=40)"
    assert jnp.allclose(z2, z2_r, atol=1e-5), "z mismatch (B=40)"

    # --- Test 3: bf16 matmul path (v5e/v6e bandwidth option), loose tolerance ---
    z3, mu3, lv3, _ = mlp_encoder_forward(
        x2, params, eps2, min_logvar=MIN_LOGVAR, max_logvar=MAX_LOGVAR,
        block_rows=16, matmul_dtype=jnp.bfloat16)
    jax.block_until_ready((z3, mu3, lv3))
    assert jnp.allclose(mu3, mu2_r, atol=0.2, rtol=0.2), "bf16 mu mismatch"
    assert jnp.all(jnp.isfinite(z3)), "bf16 z not finite"

    print("KERNEL_OK")
</pallas_src>

<mosaic_0001>
module attributes {stable_mosaic.version = 11 : i64} {
  func.func @_mlp_encoder_kernel(%arg0: i32, %arg1: memref<8x32xf32, #tpu.memory_space<vmem>>, %arg2: memref<32x32xf32, #tpu.memory_space<vmem>>, %arg3: memref<1x32xf32, #tpu.memory_space<vmem>>, %arg4: memref<32x32xf32, #tpu.memory_space<vmem>>, %arg5: memref<1x32xf32, #tpu.memory_space<vmem>>, %arg6: memref<32x32xf32, #tpu.memory_space<vmem>>, %arg7: memref<1x32xf32, #tpu.memory_space<vmem>>, %arg8: memref<8x16xf32, #tpu.memory_space<vmem>>, %arg9: memref<8x48xf32, #tpu.memory_space<vmem>>) attributes {dimension_semantics = [#tpu.dimension_semantics<parallel>], iteration_bounds = array<i64: 1>, scalar_prefetch = 0 : i64, scratch_operands = 0 : i64, tpu.core_type = #tpu.core_type<tc>, window_params = [{transform_indices = @transform_0, window_bounds = array<i64: 8, 32>}, {pipeline_mode = #tpu.pipeline_mode<synchronous>, transform_indices = @transform_1, window_bounds = array<i64: 32, 32>}, {pipeline_mode = #tpu.pipeline_mode<synchronous>, transform_indices = @transform_2, window_bounds = array<i64: 1, 32>}, {pipeline_mode = #tpu.pipeline_mode<synchronous>, transform_indices = @transform_3, window_bounds = array<i64: 32, 32>}, {pipeline_mode = #tpu.pipeline_mode<synchronous>, transform_indices = @transform_4, window_bounds = array<i64: 1, 32>}, {pipeline_mode = #tpu.pipeline_mode<synchronous>, transform_indices = @transform_5, window_bounds = array<i64: 32, 32>}, {pipeline_mode = #tpu.pipeline_mode<synchronous>, transform_indices = @transform_6, window_bounds = array<i64: 1, 32>}, {transform_indices = @transform_7, window_bounds = array<i64: 8, 16>}, {transform_indices = @transform_8, window_bounds = array<i64: 8, 48>}]} {
    %c0 = arith.constant 0 : index
    %c0_0 = arith.constant 0 : index
    %0 = vector.load %arg1[%c0, %c0_0] : memref<8x32xf32, #tpu.memory_space<vmem>>, vector<8x32xf32>
    %c0_1 = arith.constant 0 : index
    %c0_2 = arith.constant 0 : index
    %1 = vector.load %arg2[%c0_1, %c0_2] : memref<32x32xf32, #tpu.memory_space<vmem>>, vector<32x32xf32>
    %cst = arith.constant dense<0.000000e+00> : vector<8x32xf32>
    %2 = tpu.matmul %0, %1, %cst {dimension_numbers = #tpu.dot_dimension_numbers<[1], [0], [0], [1], [0, 0, 1, 1], [], []>} : vector<8x32xf32>, vector<32x32xf32>, vector<8x32xf32> -> vector<8x32xf32>
    %c0_3 = arith.constant 0 : index
    %c0_4 = arith.constant 0 : index
    %3 = vector.load %arg3[%c0_3, %c0_4] : memref<1x32xf32, #tpu.memory_space<vmem>>, vector<1x32xf32>
    %4 = vector.broadcast %3 : vector<1x32xf32> to vector<8x32xf32>
    %5 = arith.addf %2, %4 : vector<8x32xf32>
    %cst_5 = arith.constant 0.000000e+00 : f32
    %6 = vector.broadcast %cst_5 : f32 to vector<8x32xf32>
    %7 = arith.cmpf ogt, %5, %6 : vector<8x32xf32>
    %cst_6 = arith.constant 0.00999999977 : f32
    %8 = vector.broadcast %cst_6 : f32 to vector<8x32xf32>
    %9 = arith.mulf %8, %5 : vector<8x32xf32>
    %10 = arith.select %7, %5, %9 : vector<8x32xi1>, vector<8x32xf32>
    %c0_7 = arith.constant 0 : index
    %c0_8 = arith.constant 0 : index
    %11 = vector.load %arg4[%c0_7, %c0_8] : memref<32x32xf32, #tpu.memory_space<vmem>>, vector<32x32xf32>
    %cst_9 = arith.constant dense<0.000000e+00> : vector<8x32xf32>
    %12 = tpu.matmul %10, %11, %cst_9 {dimension_numbers = #tpu.dot_dimension_numbers<[1], [0], [0], [1], [0, 0, 1, 1], [], []>} : vector<8x32xf32>, vector<32x32xf32>, vector<8x32xf32> -> vector<8x32xf32>
    %c0_10 = arith.constant 0 : index
    %c0_11 = arith.constant 0 : index
    %13 = vector.load %arg5[%c0_10, %c0_11] : memref<1x32xf32, #tpu.memory_space<vmem>>, vector<1x32xf32>
    %14 = vector.broadcast %13 : vector<1x32xf32> to vector<8x32xf32>
    %15 = arith.addf %12, %14 : vector<8x32xf32>
    %cst_12 = arith.constant 0.000000e+00 : f32
    %16 = vector.broadcast %cst_12 : f32 to vector<8x32xf32>
    %17 = arith.cmpf ogt, %15, %16 : vector<8x32xf32>
    %cst_13 = arith.constant 0.00999999977 : f32
    %18 = vector.broadcast %cst_13 : f32 to vector<8x32xf32>
    %19 = arith.mulf %18, %15 : vector<8x32xf32>
    %20 = arith.select %17, %15, %19 : vector<8x32xi1>, vector<8x32xf32>
    %c0_14 = arith.constant 0 : index
    %c0_15 = arith.constant 0 : index
    %21 = vector.load %arg6[%c0_14, %c0_15] : memref<32x32xf32, #tpu.memory_space<vmem>>, vector<32x32xf32>
    %cst_16 = arith.constant dense<0.000000e+00> : vector<8x32xf32>
    %22 = tpu.matmul %20, %21, %cst_16 {dimension_numbers = #tpu.dot_dimension_numbers<[1], [0], [0], [1], [0, 0, 1, 1], [], []>} : vector<8x32xf32>, vector<32x32xf32>, vector<8x32xf32> -> vector<8x32xf32>
    %c0_17 = arith.constant 0 : index
    %c0_18 = arith.constant 0 : index
    %23 = vector.load %arg7[%c0_17, %c0_18] : memref<1x32xf32, #tpu.memory_space<vmem>>, vector<1x32xf32>
    %24 = vector.broadcast %23 : vector<1x32xf32> to vector<8x32xf32>
    %25 = arith.addf %22, %24 : vector<8x32xf32>
    %26 = vector.extract_strided_slice %25 {offsets = [0, 0], sizes = [8, 16], strides = [1, 1]} : vector<8x32xf32> to vector<8x16xf32>
    %27 = vector.extract_strided_slice %25 {offsets = [0, 16], sizes = [8, 16], strides = [1, 1]} : vector<8x32xf32> to vector<8x16xf32>
    %cst_19 = arith.constant -1.000000e+01 : f32
    %cst_20 = arith.constant 2.000000e+00 : f32
    %28 = vector.broadcast %cst_19 : f32 to vector<8x16xf32>
    %29 = arith.maximumf %28, %27 : vector<8x16xf32>
    %30 = vector.broadcast %cst_20 : f32 to vector<8x16xf32>
    %31 = arith.minimumf %30, %29 : vector<8x16xf32>
    %cst_21 = arith.constant 5.000000e-01 : f32
    %32 = vector.broadcast %cst_21 : f32 to vector<8x16xf32>
    %33 = arith.mulf %32, %31 : vector<8x16xf32>
    %34 = math.exp %33 : vector<8x16xf32>
    %c0_22 = arith.constant 0 : index
    %c0_23 = arith.constant 0 : index
    %35 = vector.load %arg8[%c0_22, %c0_23] : memref<8x16xf32, #tpu.memory_space<vmem>>, vector<8x16xf32>
    %36 = arith.mulf %35, %34 : vector<8x16xf32>
    %37 = arith.addf %26, %36 : vector<8x16xf32>
    %38 = tpu.concatenate %37, %26, %31 in 1 : vector<8x16xf32>, vector<8x16xf32>, vector<8x16xf32> -> vector<8x48xf32>
    %c0_24 = arith.constant 0 : index
    %c0_25 = arith.constant 0 : index
    %39 = vector.load %arg9[%c0_24, %c0_25] : memref<8x48xf32, #tpu.memory_space<vmem>>, vector<8x48xf32>
    tpu.vector_store %arg9[%c0_24, %c0_25], %38 {strides = array<i32>} : memref<8x48xf32, #tpu.memory_space<vmem>>, vector<8x48xf32>,
    return
  }
  func.func @transform_0(%arg0: i32) -> (i32, i32) {
    %c0_i32 = arith.constant 0 : i32
    %c0_i32_0 = arith.constant 0 : i32
    return %arg0, %c0_i32 : i32, i32
  }
  func.func @transform_1(%arg0: i32) -> (i32, i32) {
    %c0_i32 = arith.constant 0 : i32
    %c0_i32_0 = arith.constant 0 : i32
    %c0_i32_1 = arith.constant 0 : i32
    return %c0_i32, %c0_i32_0 : i32, i32
  }
  func.func @transform_2(%arg0: i32) -> (i32, i32) {
    %c0_i32 = arith.constant 0 : i32
    %c0_i32_0 = arith.constant 0 : i32
    %c0_i32_1 = arith.constant 0 : i32
    return %c0_i32, %c0_i32_0 : i32, i32
  }
  func.func @transform_3(%arg0: i32) -> (i32, i32) {
    %c0_i32 = arith.constant 0 : i32
    %c0_i32_0 = arith.constant 0 : i32
    %c0_i32_1 = arith.constant 0 : i32
    return %c0_i32, %c0_i32_0 : i32, i32
  }
  func.func @transform_4(%arg0: i32) -> (i32, i32) {
    %c0_i32 = arith.constant 0 : i32
    %c0_i32_0 = arith.constant 0 : i32
    %c0_i32_1 = arith.constant 0 : i32
    return %c0_i32, %c0_i32_0 : i32, i32
  }
  func.func @transform_5(%arg0: i32) -> (i32, i32) {
    %c0_i32 = arith.constant 0 : i32
    %c0_i32_0 = arith.constant 0 : i32
    %c0_i32_1 = arith.constant 0 : i32
    return %c0_i32, %c0_i32_0 : i32, i32
  }
  func.func @transform_6(%arg0: i32) -> (i32, i32) {
    %c0_i32 = arith.constant 0 : i32
    %c0_i32_0 = arith.constant 0 : i32
    %c0_i32_1 = arith.constant 0 : i32
    return %c0_i32, %c0_i32_0 : i32, i32
  }
  func.func @transform_7(%arg0: i32) -> (i32, i32) {
    %c0_i32 = arith.constant 0 : i32
    %c0_i32_0 = arith.constant 0 : i32
    return %arg0, %c0_i32 : i32, i32
  }
  func.func @transform_8(%arg0: i32) -> (i32, i32) {
    %c0_i32 = arith.constant 0 : i32
    %c0_i32_0 = arith.constant 0 : i32
    return %arg0, %c0_i32 : i32, i32
  }
}

</mosaic_0001>

<bundles_post_ra>
// kernel: tpu_custom_call.1
= control target key start
LH: loop header
LB: loop body
LE: loop exit
PB: predicated region body
PF: predicated region fallthrough
CT: control target
= control target key end

     0   :  { %13 = vsyncpa [#allocation3], 0  ;;  %s734_s0 = inlined_call_operand.hbm [shape: f32[8,32], index: 0, kind: input, shape index: {}]   ;;  %s735_s1 = inlined_call_operand.hbm [shape: f32[32,32], index: 1, kind: input, shape index: {}]   ;;  %s736_s2 = inlined_call_operand.vmem [shape: f32[1,32], index: 2, kind: input, shape index: {}]   ;;  %s737_s3 = inlined_call_operand.hbm [shape: f32[32,32], index: 3, kind: input, shape index: {}]   ;;  %s738_s4 = inlined_call_operand.vmem [shape: f32[1,32], index: 4, kind: input, shape index: {}]   ;;  %s739_s5 = inlined_call_operand.hbm [shape: f32[32,32], index: 5, kind: input, shape index: {}]   ;;  %s740_s6 = inlined_call_operand.vmem [shape: f32[1,32], index: 6, kind: input, shape index: {}]   ;;  %s741_s7 = inlined_call_operand.vmem [shape: f32[8,16], index: 7, kind: input, shape index: {}]   ;;  %s742_s8 = inlined_call_operand.hbm [shape: f32[8,48], index: 8, kind: output, shape index: {}]  }
   0x1   :  { %14 = vsyncpa [#allocation6], 0 }
   0x2   :  { %15 = vsyncpa [#allocation9], 0 }
   0x3   :  { %16 = vsyncpa [#allocation4], 0  ;;  %s589_s27 = smov [#allocation5]   ;;  %s471_s9 = scalar_lea.hbm %s735_s1, 512 }
   0x4   :  { %s32_s28 = sshll.u32 %s589_s27, 4  ;;  %p472_p0 = scmp.ne.s32.totalorder %s735_s1, %s471_s9  ;;  %s33_s28 = int_to_ptr.vmem [resolvable:$true] %s32_s28 }
   0x5   :  { %p475_p1 = scmp.lt.u32.totalorder %s471_s9, %s735_s1 }
   0x7   :  { %p477_p2 = pnand %p475_p1, %p472_p0 }
   0x9   :  { %480 = shalt.err (!%p477_p2)
}
   0xa   :  { %s481_s14 = scalar_lea.vmem %s33_s28, 512  ;;  %p486_p4 = scmp.lt.s32.totalorder %s33_s28, %s33_s28 }
   0xb   :  { %p482_p3 = scmp.ne.s32.totalorder %s33_s28, %s481_s14  ;;  %p487_p5 = scmp.lt.s32.totalorder %s481_s14, %s481_s14 }
   0xd   :  { %p488_p6 = por %p487_p5, %p486_p4 }
   0xf   :  { %p489_p7 = pnand %p488_p6, %p482_p3 }
  0x11   :  { %492 = shalt.err (!%p489_p7)
}
  0x12   :  { %s590_s15 = smov 128   ;;  %s591_s16 = smov 8  }
  0x13   :  { %38 = dma.hbm_to_vmem [thread:$0]  %s735_s1, 512, %s33_s28, [#allocation6], %s590_s15, %s590_s15, %s591_s16  }
  0x14   :  { %s592_s19 = smov [#allocation2]   ;;  %s593_s21 = smov [#allocation7]  }
  0x15   :  { %s23_s20 = sshll.u32 %s592_s19, 4  ;;  %s46_s22 = sshll.u32 %s593_s21, 4  ;;  %s24_s20 = int_to_ptr.vmem [resolvable:$true] %s23_s20  ;;  %s47_s22 = int_to_ptr.vmem [resolvable:$true] %s46_s22 }
  0x16   :  { %s493_s25 = scalar_lea.hbm %s734_s0, 128 }
  0x17   :  { %p494_p8 = scmp.ne.s32.totalorder %s734_s0, %s493_s25  ;;  %p497_p9 = scmp.lt.u32.totalorder %s493_s25, %s734_s0 }
  0x19   :  { %p499_p10 = pnand %p497_p9, %p494_p8 }
  0x1b   :  { %502 = shalt.err (!%p499_p10)
}
  0x1c   :  { %s503_s1 = scalar_lea.vmem %s24_s20, 128  ;;  %p508_p12 = scmp.lt.s32.totalorder %s24_s20, %s24_s20 }
  0x1d   :  { %p504_p11 = scmp.ne.s32.totalorder %s24_s20, %s503_s1  ;;  %p509_p13 = scmp.lt.s32.totalorder %s503_s1, %s503_s1 }
  0x1f   :  { %p510_p0 = por %p509_p13, %p508_p12 }
  0x21   :  { %p511_p1 = pnand %p510_p0, %p504_p11 }
  0x23   :  { %514 = shalt.err (!%p511_p1)
}
  0x24   :  { %26 = dma.hbm_to_vmem [thread:$0]  %s734_s0, 128, %s24_s20, [#allocation3]  }
  0x25   :  { %s515_s12 = scalar_lea.hbm %s737_s3, 512 }
  0x26   :  { %p516_p2 = scmp.ne.s32.totalorder %s737_s3, %s515_s12  ;;  %p519_p3 = scmp.lt.u32.totalorder %s515_s12, %s737_s3 }
  0x28   :  { %p521_p4 = pnand %p519_p3, %p516_p2 }
  0x2a   :  { %524 = shalt.err (!%p521_p4)
}
  0x2b   :  { %s525_s19 = scalar_lea.vmem %s47_s22, 512  ;;  %p530_p6 = scmp.lt.s32.totalorder %s47_s22, %s47_s22 }
  0x2c   :  { %p526_p5 = scmp.ne.s32.totalorder %s47_s22, %s525_s19  ;;  %p531_p7 = scmp.lt.s32.totalorder %s525_s19, %s525_s19 }
  0x2e   :  { %p532_p8 = por %p531_p7, %p530_p6 }
  0x30   :  { %p533_p9 = pnand %p532_p8, %p526_p5 }
  0x32   :  { %536 = shalt.err (!%p533_p9)
}
  0x33   :  { %52 = dma.hbm_to_vmem [thread:$0]  %s737_s3, 512, %s47_s22, [#allocation6], %s590_s15, %s590_s15, %s591_s16  }
  0x34   :  { %s594_s21 = smov [#allocation8]   ;;  %s537_s26 = scalar_lea.hbm %s739_s5, 512 }
  0x35   :  { %s60_s23 = sshll.u32 %s594_s21, 4  ;;  %p538_p10 = scmp.ne.s32.totalorder %s739_s5, %s537_s26  ;;  %s61_s23 = int_to_ptr.vmem [resolvable:$true] %s60_s23 }
  0x36   :  { %p541_p11 = scmp.lt.u32.totalorder %s537_s26, %s739_s5 }
  0x38   :  { %p543_p12 = pnand %p541_p11, %p538_p10 }
  0x3a   :  { %546 = shalt.err (!%p543_p12)
}
  0x3b   :  { %s547_s28 = scalar_lea.vmem %s61_s23, 512  ;;  %p552_p0 = scmp.lt.s32.totalorder %s61_s23, %s61_s23 }
  0x3c   :  { %p548_p13 = scmp.ne.s32.totalorder %s61_s23, %s547_s28  ;;  %p553_p1 = scmp.lt.s32.totalorder %s547_s28, %s547_s28 }
  0x3e   :  { %p554_p2 = por %p553_p1, %p552_p0 }
  0x40   :  { %p555_p3 = pnand %p554_p2, %p548_p13 }
  0x42   :  { %558 = shalt.err (!%p555_p3)
}
  0x43   :  { %66 = dma.hbm_to_vmem [thread:$0]  %s739_s5, 512, %s61_s23, [#allocation9], %s590_s15, %s590_s15, %s591_s16  }
  0x44   :  { %581 = dma.done.wait [#allocation3], 128  }
  0x45   :  { %582 = vsyncadd [#allocation3], 4294967168 }
  0x46   :  { %583 = dma.done.wait [#allocation6], 1024  }
  0x47   :  { %584 = vsyncadd [#allocation6], 4294966272 }
  0x48   :  { %585 = dma.done.wait [#allocation9], 512  }
  0x49   :  { %586 = vsyncadd [#allocation9], 4294966784  ;;  %v595_v0 = vmov 0.0|0.0   ;;  %vm596_vm0 = vmmov 0   ;;  %v597_v1 = vmov 0.0   ;;  %v84_v2 = vld [vmem:[#allocation5] sm:$0xff] }
  0x4a   :  { %439 = vmatprep.subr.bf16.mxu0 %v595_v0  ;;  %414 = vmatprep.mubr.msk.f32.mxu0 %vm596_vm0, %v597_v1  ;;  %v85_v3 = vld [vmem:[#allocation5 + $0x8] sm:$0xff]  ;;  %v86_v4 = vld [vmem:[#allocation5 + $0x10] sm:$0xff]  ;;  %v87_v6 = vld [vmem:[#allocation5 + $0x18] sm:$0xff]  ;;  %vm95_vm1 = vcmask 261120   ;;  %s598_s11 = smov 16   ;;  %vm363_vm4 = vcmask 130048  }
  0x4b   :  { %445 = vmatprep.subr.bf16.mxu1 %v595_v0  ;;  %425 = vmatprep.mubr.msk.f32.mxu1 %vm596_vm0, %v597_v1  ;;  %v440_v5 = vpack.c.bf16 %v85_v3, %v84_v2  ;;  %v172_v7 = vld [vmem:[#allocation7] sm:$0xff]  ;;  %v173_v8 = vld [vmem:[#allocation7 + $0x8] sm:$0xff]  ;;  %v443_v9 = vpack.c.bf16 %v87_v6, %v86_v4  ;;  %v83_v11 = vld [vmem:[#allocation2] sm:$0xff]  ;;  %vm366_vm5 = vcmask 392192  }
  0x4c   :  { %v446_v10 = vpack.c.bf16 %v173_v8, %v172_v7  ;;  %v174_v12 = vld [vmem:[#allocation7 + $0x10] sm:$0xff]  ;;  %v175_v13 = vld [vmem:[#allocation7 + $0x18] sm:$0xff]  ;;  %v259_v15 = vld [vmem:[#allocation8] sm:$0xff] }
  0x4d   :  { %441 = vmatpush3.bf16.msra.mxu0 %v440_v5  ;;  %v449_v14 = vpack.c.bf16 %v175_v13, %v174_v12  ;;  %v260_v16 = vld [vmem:[#allocation8 + $0x8] sm:$0xff]  ;;  %v385_v18 = vld [vmem:[%s736_s2] ss:$0 sm:$0xff]  ;;  %v261_v24 = vld [vmem:[#allocation8 + $0x10] sm:$0xff] }
  0x4e   :  { %442 = vmatprep.subr.bf16.mxu0 %v595_v0  ;;  %447 = vmatpush3.bf16.msra.mxu1 %v446_v10  ;;  %v452_v17 = vpack.c.bf16 %v260_v16, %v259_v15  ;;  %v262_v25 = vld [vmem:[#allocation8 + $0x18] sm:$0xff] }
  0x4f   :  { %448 = vmatprep.subr.bf16.mxu1 %v595_v0  ;;  %v455_v26 = vpack.c.bf16 %v262_v25, %v261_v24  ;;  %v387_v27 = vld [vmem:[%s738_s4] ss:$0 sm:$0xff]  ;;  %s599_s4 = smov 112  }
  0x50   :  { %v389_v33 = vld [vmem:[%s740_s6] ss:$0 sm:$0xff]  ;;  %s600_s6 = smov [#allocation10]  }
  0x51   :  { %444 = vmatpush3.bf16.msra.mxu0 %v443_v9  ;;  %v348_v42 = vld [vmem:[%s741_s7] sm:$0xff]  ;;  %s374_s14 = sshll.u32 %s600_s6, 4  ;;  %s375_s14 = int_to_ptr.vmem [resolvable:$true] %s374_s14 }
  0x52   :  { %451 = vmatprep.subr.bf16.mxu0 %v595_v0  ;;  %450 = vmatpush3.bf16.msra.mxu1 %v449_v14  ;;  %s559_s17 = scalar_lea.vmem %s375_s14, 128  ;;  %p564_p5 = scmp.lt.s32.totalorder %s375_s14, %s375_s14 }
  0x53   :  { %p560_p4 = scmp.ne.s32.totalorder %s375_s14, %s559_s17  ;;  %p565_p6 = scmp.lt.s32.totalorder %s559_s17, %s559_s17 }
  0x54   :  { %415 = vmatmul.mubr.msk.f32.vlgmr.msra.gmra.mrb[0].mxu0 %vm95_vm1, %v83_v11 }
  0x55   :  { %436 = vmatprep.mubr.msk.f32.mxu0 %vm596_vm0, %v597_v1  ;;  %453 = vmatpush3.bf16.msra.mxu0 %v452_v17  ;;  %p566_p7 = por %p565_p6, %p564_p5 }
  0x56   :  { %454 = vmatprep.subr.bf16.mxu0 %v595_v0 }
  0x57   :  { %p567_p8 = pnand %p566_p7, %p560_p4 }
  0x59   :  { %456 = vmatpush3.bf16.msra.mxu0 %v455_v26 }
 0x127   :  { %v165_v19 = vpop.f32.mrb[0].mxu0 }
 0x128   :  { %v166_v20 = vadd.f32 %v385_v18, %v165_v19  ;;  %v416_v21 = vpop.f32.mrb[1].mxu0 }
 0x12a   :  { %vm169_vm2 = vcmp.gt.f32.partialorder %v166_v20, 0.0  ;;  %v170_v22 = vmul.f32 0.01, %v166_v20 }
 0x12c   :  { %v171_v23 = vsel %vm169_vm2, %v166_v20, %v170_v22 }
 0x12d   :  { %426 = vmatmul.mubr.msk.f32.vlgmr.msra.gmra.mrb[0].mxu1 %vm95_vm1, %v171_v23 }
 0x200   :  { %v252_v28 = vpop.f32.mrb[0].mxu1 }
 0x201   :  { %v253_v29 = vadd.f32 %v387_v27, %v252_v28  ;;  %v427_v30 = vpop.f32.mrb[1].mxu1 }
 0x203   :  { %vm256_vm3 = vcmp.gt.f32.partialorder %v253_v29, 0.0  ;;  %v257_v31 = vmul.f32 0.01, %v253_v29 }
 0x205   :  { %v258_v32 = vsel %vm256_vm3, %v253_v29, %v257_v31 }
 0x206   :  { %437 = vmatmul.mubr.msk.f32.vlgmr.msra.gmra.mrb[2].mxu0 %vm95_vm1, %v258_v32 }
 0x2d9   :  { %v339_v34 = vpop.f32.mrb[2].mxu0 }
 0x2da   :  { %v340_v35 = vadd.f32 %v389_v33, %v339_v34  ;;  %v438_v36 = vpop.f32.mrb[3].mxu0 }
 0x2dc   :  { %v343_v37 = vmax.f32 %v340_v35, -10.0 }
 0x2de   :  { %v344_v38 = vmin.f32 %v343_v37, 2.0 }
 0x2e0   :  { %360 = vrot.lane.b32.xlu1 %v344_v38, %s598_s11  ;;  %v345_v39 = vmul.f32 0.5, %v344_v38 }
 0x2e2   :  { %v346_v40 = vmul.f32 1.442695, %v345_v39 }
 0x2e4   :  { %469 = vpow2.f32 %v346_v40 }
 0x2ee   :  { %v470_v41 = vpop.eup %469 }
 0x2ef   :  { %350 = vrot.lane.b32.xlu0 %v470_v41, %s599_s4 }
 0x2f3   :  { %356 = vrot.lane.b32.xlu0 %v340_v35, %s598_s11 }
 0x352   :  { %v361_v47 = vpop.permute.xlu1 %360 }
 0x361   :  { %v351_v43 = vpop.permute.xlu0 %350 }
 0x362   :  { %v353_v44 = vmul.f32 %v351_v43, %v348_v42 }
 0x364   :  { %v354_v45 = vadd.f32 %v353_v44, %v340_v35 }
 0x365   :  { %v357_v46 = vpop.permute.xlu0 %356 }
 0x366   :  { %v364_v48 = vsel %vm363_vm4, %v354_v45, %v357_v46 }
 0x367   :  { %v365_v49 = vsel %vm95_vm1, %v364_v48, %v361_v47 }
 0x368   :  { %367 = vst.msk [vmem:[#allocation10] sm:$0xff] %vm366_vm5, %v365_v49 }
 0x369   :  { %570 = shalt.err (!%p567_p8)
}
 0x36a   :  { %s571_s19 = scalar_lea.hbm %s742_s8, 128 }
 0x36b   :  { %p572_p9 = scmp.ne.s32.totalorder %s742_s8, %s571_s19  ;;  %p575_p10 = scmp.lt.u32.totalorder %s571_s19, %s742_s8 }
 0x36d   :  { %p577_p11 = pnand %p575_p10, %p572_p9 }
 0x36f   :  { %580 = shalt.err (!%p577_p11)
}
 0x370   :  { %377 = dma.vmem_to_hbm [thread:$0]  %s375_s14, 128, %s742_s8, [#allocation4]  }
 0x371   :  { %587 = dma.done.wait [#allocation4], 128  }
 0x372   :  { %588 = vsyncadd [#allocation4], 4294967168 }
 0x373   :  { %381 = vsyncpa [#allocation3], 1 }
 0x374   :  { %382 = vsyncpa [#allocation6], 1 }
 0x375   :  { %383 = vsyncpa [#allocation9], 1 }
 0x376   :  { %384 = vsyncpa [#allocation4], 1 }

</bundles_post_ra>
